<compile_context>
chip_gen: v6e
topology: v6e:2x2x1
jax: 0.10.0
libtpu: 0.0.40
codegen_flags: <defaults>
</compile_context>

<pallas_src>
import jax
import jax.numpy as jnp
from jax.experimental import pallas as pl
from jax.experimental.pallas import tpu as pltpu


# --------------------------------------------------------------------------- #
# in-kernel helpers
# --------------------------------------------------------------------------- #
def _layer_norm(x, g, b, eps):
    mu = jnp.mean(x, axis=-1, keepdims=True)
    var = jnp.mean((x - mu) ** 2, axis=-1, keepdims=True)
    return (x - mu) * jax.lax.rsqrt(var + eps) * g + b


def _gelu_tanh(x):
    c = 0.7978845608028654  # sqrt(2/pi)
    return 0.5 * x * (1.0 + jnp.tanh(c * (x + 0.044715 * x * x * x)))


def _linear(x, w, b):
    """x: (B,S,Din) f32, w: (Din,Dout) bf16, b: (1,Dout) f32 -> (B,S,Dout) f32.

    Single 2-D MXU matmul over the flattened tokens; bias added as a 2-D
    broadcast (hoisted, no per-call 3-D broadcast_in_dim).
    """
    B_, S_, Din = x.shape
    y = jnp.dot(x.reshape(B_ * S_, Din).astype(w.dtype), w,
                preferred_element_type=jnp.float32)
    return (y + b).reshape(B_, S_, w.shape[1])


# --------------------------------------------------------------------------- #
# preprocessing + patch-embed kernel (runs once per encoder call)
# --------------------------------------------------------------------------- #
def make_preproc_kernel(*, hidden, mask_tile, ln_eps, apply_pre_ln, has_mask,
                        vr_low, vr_high):
    inv_range = 1.0 / (vr_high - vr_low)
    D = hidden

    def kernel(*refs):
        if has_mask:
            (patches_ref, maskp_ref, mean_ref, inv_std_ref, pw_ref, pb_ref,
             cls_ref, pos_ref, pre_g_ref, pre_b_ref, out_ref) = refs
        else:
            (patches_ref, mean_ref, inv_std_ref, pw_ref, pb_ref,
             cls_ref, pos_ref, pre_g_ref, pre_b_ref, out_ref) = refs

        # value-range rescale -> optional mask -> per-channel Normalize
        x = patches_ref[...]                              # (B, N, F) f32
        x = (x - vr_low) * inv_range
        if has_mask:
            m = maskp_ref[...]                            # (B, N, p*p*mask_C)
            if mask_tile > 1:                             # broadcast over channels
                m = jnp.concatenate([m] * mask_tile, axis=-1)
            x = x * m
        x = (x - mean_ref[...]) * inv_std_ref[...]        # (1, F) broadcasts

        B, N, F = x.shape
        # patch embedding (Conv2d stride=patch == matmul on flattened patches)
        emb = jnp.dot(x.reshape(B * N, F).astype(pw_ref.dtype), pw_ref[...],
                      preferred_element_type=jnp.float32)
        emb = (emb + pb_ref[...]).reshape(B, N, D)        # (B, N, D)

        # prepend CLS, add position embedding (once, outside the layer hot path)
        out_ref[:, 0:1, :] = jnp.broadcast_to(cls_ref[...][None], (B, 1, D))
        out_ref[:, 1:, :] = emb
        h = out_ref[...] + pos_ref[...][None]             # (B, S, D)
        if apply_pre_ln:                                  # CLIP pre-layernorm
            h = _layer_norm(h, pre_g_ref[...], pre_b_ref[...], ln_eps)
        out_ref[...] = h

    return kernel


# --------------------------------------------------------------------------- #
# layer-streamed transformer kernel: grid over layers, residual in VMEM scratch
# --------------------------------------------------------------------------- #
def make_transformer_kernel(*, num_heads, hidden, ln_eps, apply_final_ln):
    head_dim = hidden // num_heads
    att_scale = 1.0 / float(head_dim) ** 0.5
    D = hidden

    def kernel(h0_ref, ln1_g_ref, ln1_b_ref, qkv_w_ref, qkv_b_ref,
               proj_w_ref, proj_b_ref, ln2_g_ref, ln2_b_ref,
               fc1_w_ref, fc1_b_ref, fc2_w_ref, fc2_b_ref,
               fin_g_ref, fin_b_ref, out_ref, h_scr):
        l = pl.program_id(0)

        @pl.when(l == 0)
        def _():
            h_scr[...] = h0_ref[...]

        h = h_scr[...]                                    # (B, S, D) f32
        B, S, _ = h.shape

        # ---- multi-head self-attention (pre-norm) ----
        hn = _layer_norm(h, ln1_g_ref[...], ln1_b_ref[...], ln_eps)
        qkv = _linear(hn, qkv_w_ref[0], qkv_b_ref[0])     # (B, S, 3D) f32

        head_outs = []
        for hh in range(num_heads):
            q0 = hh * head_dim
            qh = (qkv[..., q0:q0 + head_dim] * att_scale).astype(jnp.bfloat16)
            kh = qkv[..., D + q0:D + q0 + head_dim].astype(jnp.bfloat16)
            vh = qkv[..., 2 * D + q0:2 * D + q0 + head_dim].astype(jnp.bfloat16)
            s = jnp.einsum('bqd,bkd->bqk', qh, kh,
                           preferred_element_type=jnp.float32)
            s = s - jnp.max(s, axis=-1, keepdims=True)
            p = jnp.exp(s)
            p = p * pl.reciprocal(jnp.sum(p, axis=-1, keepdims=True), approx=True)
            head_outs.append(jnp.einsum('bqk,bkd->bqd', p.astype(jnp.bfloat16),
                                        vh, preferred_element_type=jnp.float32))
        attn = jnp.concatenate(head_outs, axis=-1)        # (B, S, D) lane-dense
        attn = _linear(attn, proj_w_ref[0], proj_b_ref[0])
        h = h + attn

        # ---- MLP (pre-norm, GELU) ----
        hn = _layer_norm(h, ln2_g_ref[...], ln2_b_ref[...], ln_eps)
        m = _linear(hn, fc1_w_ref[0], fc1_b_ref[0])
        m = _gelu_tanh(m)
        m = _linear(m, fc2_w_ref[0], fc2_b_ref[0])
        h = h + m

        h_scr[...] = h

        @pl.when(l == pl.num_programs(0) - 1)
        def _():
            hf = h
            if apply_final_ln:                            # DINOv2 final LN
                hf = _layer_norm(hf, fin_g_ref[...], fin_b_ref[...], ln_eps)
            out_ref[...] = hf.astype(out_ref.dtype)

    return kernel


# --------------------------------------------------------------------------- #
# JAX-side glue: params, patchify, encoder wrapper
# --------------------------------------------------------------------------- #
def _patchify(x, p):
    """NCHW -> (B, N_patches, C*p*p) with feature order (c, ph, pw)."""
    B, C, H, W = x.shape
    gh, gw = H // p, W // p
    x = x.reshape(B, C, gh, p, gw, p)
    x = x.transpose(0, 2, 4, 1, 3, 5)          # (B, gh, gw, C, p, p)
    return x.reshape(B, gh * gw, C * p * p)


def _init_params(key, *, feat, hidden, seq_len, num_layers, mlp_dim):
    ks = jax.random.split(key, 8)
    s = 0.02
    f32, bf16 = jnp.float32, jnp.bfloat16
    L, D, M = num_layers, hidden, mlp_dim
    return dict(
        # matmul weights stored bf16 (halves HBM traffic / VMEM, feeds MXU)
        patch_w=(jax.random.normal(ks[0], (feat, D), f32) * s).astype(bf16),
        patch_b=jnp.zeros((1, D), f32),
        cls=jax.random.normal(ks[1], (1, D), f32) * s,
        pos=jax.random.normal(ks[2], (seq_len, D), f32) * s,
        pre_g=jnp.ones((1, D), f32), pre_b=jnp.zeros((1, D), f32),
        # per-layer stacks, shaped so a (1, ...) block has full last-2 dims
        ln1_g=jnp.ones((L, 1, D), f32), ln1_b=jnp.zeros((L, 1, D), f32),
        qkv_w=(jax.random.normal(ks[3], (L, D, 3 * D), f32) * s).astype(bf16),
        qkv_b=jnp.zeros((L, 1, 3 * D), f32),
        proj_w=(jax.random.normal(ks[4], (L, D, D), f32) * s).astype(bf16),
        proj_b=jnp.zeros((L, 1, D), f32),
        ln2_g=jnp.ones((L, 1, D), f32), ln2_b=jnp.zeros((L, 1, D), f32),
        fc1_w=(jax.random.normal(ks[5], (L, D, M), f32) * s).astype(bf16),
        fc1_b=jnp.zeros((L, 1, M), f32),
        fc2_w=(jax.random.normal(ks[6], (L, M, D), f32) * s).astype(bf16),
        fc2_b=jnp.zeros((L, 1, D), f32),
        fin_g=jnp.ones((1, 1, D), f32), fin_b=jnp.zeros((1, 1, D), f32),
    )


class PallasImageEncoder:
    """Synthetic mini-ViT image encoder (DINO/CLIP-style) with layer-streamed Pallas kernels."""

    def __init__(self, key, *, image_size, patch_size, in_channels, hidden,
                 num_layers, num_heads, mlp_ratio, mean, std, ln_eps,
                 apply_pre_ln, apply_final_ln, use_cls_token=True):
        assert image_size % patch_size == 0 and hidden % num_heads == 0
        self.patch_size = patch_size
        self.hidden = hidden
        self.in_channels = in_channels
        self.num_layers = num_layers
        self.num_heads = num_heads
        self.mlp_dim = hidden * mlp_ratio
        self.ln_eps = ln_eps
        self.apply_pre_ln = apply_pre_ln
        self.apply_final_ln = apply_final_ln
        self.use_cls_token = use_cls_token
        self.num_patches = (image_size // patch_size) ** 2
        self.seq_len = self.num_patches + 1     # CLS always present in the backbone
        feat = in_channels * patch_size * patch_size

        self.params = _init_params(key, feat=feat, hidden=hidden,
                                   seq_len=self.seq_len, num_layers=num_layers,
                                   mlp_dim=self.mlp_dim)
        # per-feature Normalize constants in (c, ph, pw) order
        self.mean_f = jnp.repeat(jnp.asarray(mean, jnp.float32),
                                 patch_size * patch_size).reshape(1, feat)
        self.inv_std_f = (1.0 / jnp.repeat(jnp.asarray(std, jnp.float32),
                                           patch_size * patch_size)).reshape(1, feat)

        self.transformer_kernel = make_transformer_kernel(
            num_heads=num_heads, hidden=hidden, ln_eps=ln_eps,
            apply_final_ln=apply_final_ln)

    # ------------------------------------------------------------------ #
    def _run_preproc(self, patches, maskp, mask_tile):
        B = patches.shape[0]
        has_mask = maskp is not None
        kernel = make_preproc_kernel(
            hidden=self.hidden, mask_tile=mask_tile, ln_eps=self.ln_eps,
            apply_pre_ln=self.apply_pre_ln, has_mask=has_mask,
            vr_low=-1.0, vr_high=1.0)

        P = self.params
        args = [patches]
        if has_mask:
            args.append(maskp)
        args += [self.mean_f, self.inv_std_f, P['patch_w'], P['patch_b'],
                 P['cls'], P['pos'], P['pre_g'], P['pre_b']]

        vmem = pl.BlockSpec(memory_space=pltpu.MemorySpace.VMEM)
        return pl.pallas_call(
            kernel,
            out_shape=jax.ShapeDtypeStruct((B, self.seq_len, self.hidden),
                                           jnp.float32),
            in_specs=[vmem] * len(args),
            out_specs=vmem,
        )(*args)

    def _run_transformer(self, h0):
        B = h0.shape[0]
        L, D, S, M = self.num_layers, self.hidden, self.seq_len, self.mlp_dim
        P = self.params

        layer_specs = [
            pl.BlockSpec((1, 1, D), lambda l: (l, 0, 0)),       # ln1_g
            pl.BlockSpec((1, 1, D), lambda l: (l, 0, 0)),       # ln1_b
            pl.BlockSpec((1, D, 3 * D), lambda l: (l, 0, 0)),   # qkv_w
            pl.BlockSpec((1, 1, 3 * D), lambda l: (l, 0, 0)),   # qkv_b
            pl.BlockSpec((1, D, D), lambda l: (l, 0, 0)),       # proj_w
            pl.BlockSpec((1, 1, D), lambda l: (l, 0, 0)),       # proj_b
            pl.BlockSpec((1, 1, D), lambda l: (l, 0, 0)),       # ln2_g
            pl.BlockSpec((1, 1, D), lambda l: (l, 0, 0)),       # ln2_b
            pl.BlockSpec((1, D, M), lambda l: (l, 0, 0)),       # fc1_w
            pl.BlockSpec((1, 1, M), lambda l: (l, 0, 0)),       # fc1_b
            pl.BlockSpec((1, M, D), lambda l: (l, 0, 0)),       # fc2_w
            pl.BlockSpec((1, 1, D), lambda l: (l, 0, 0)),       # fc2_b
        ]
        in_specs = ([pl.BlockSpec((B, S, D), lambda l: (0, 0, 0))]   # h0
                    + layer_specs
                    + [pl.BlockSpec((1, 1, D), lambda l: (0, 0, 0)),  # fin_g
                       pl.BlockSpec((1, 1, D), lambda l: (0, 0, 0))])  # fin_b

        return pl.pallas_call(
            self.transformer_kernel,
            out_shape=jax.ShapeDtypeStruct((B, S, D), jnp.float32),
            grid_spec=pltpu.PrefetchScalarGridSpec(
                num_scalar_prefetch=0,
                grid=(L,),
                in_specs=in_specs,
                out_specs=pl.BlockSpec((B, S, D), lambda l: (0, 0, 0)),
                scratch_shapes=[pltpu.VMEM((B, S, D), jnp.float32)]),
            compiler_params=pltpu.CompilerParams(
                dimension_semantics=("arbitrary",)),
        )(h0, P['ln1_g'], P['ln1_b'], P['qkv_w'], P['qkv_b'],
          P['proj_w'], P['proj_b'], P['ln2_g'], P['ln2_b'],
          P['fc1_w'], P['fc1_b'], P['fc2_w'], P['fc2_b'],
          P['fin_g'], P['fin_b'])

    # ------------------------------------------------------------------ #
    def __call__(self, image, mask=None):
        # TODO(synk): torchvision bilinear Resize + CenterCrop of ImageEncoder.transform
        # are not implemented; inputs are assumed to already be (image_size, image_size).
        B, C, H, W = image.shape
        p = self.patch_size
        patches = _patchify(image.astype(jnp.float32), p)        # (B, N, F)

        if mask is None:
            maskp, mask_tile = None, 1                           # no ones-mask materialized
        else:
            mask = mask.astype(jnp.float32)
            mask_c = mask.shape[1]
            maskp = _patchify(mask, p)                           # (B, N, mask_c*p*p)
            mask_tile = C // mask_c                              # broadcast channels in-kernel

        h0 = self._run_preproc(patches, maskp, mask_tile)
        out = self._run_transformer(h0)

        if not self.use_cls_token:
            out = out[:, 1:, :]
        return out

    def unconditional_embedding(self, batch_size):
        n = self.seq_len if self.use_cls_token else self.num_patches
        return jnp.zeros((batch_size, n, self.hidden), jnp.float32)


class DualImageEncoderPallas:
    """Pallas equivalent of DualImageEncoder: 'main' (DINO-like) + 'additional' (CLIP-like)."""

    def __init__(self, key, main_cfg, additional_cfg):
        k1, k2 = jax.random.split(key)
        self.main_image_encoder = PallasImageEncoder(k1, **main_cfg)
        self.additional_image_encoder = PallasImageEncoder(k2, **additional_cfg)

    def __call__(self, image, mask=None):
        # The two encoders are independent pallas_calls; on multi-core parts
        # (v7x) XLA may overlap their execution.
        return {'main': self.main_image_encoder(image, mask=mask),
                'additional': self.additional_image_encoder(image, mask=mask)}

    def unconditional_embedding(self, batch_size):
        return {'main': self.main_image_encoder.unconditional_embedding(batch_size),
                'additional': self.additional_image_encoder.unconditional_embedding(batch_size)}


# --------------------------------------------------------------------------- #
# demo
# --------------------------------------------------------------------------- #
if __name__ == "__main__":
    key = jax.random.PRNGKey(0)
    k_params, k_img, k_mask = jax.random.split(key, 3)

    # small shapes: batch=2, C=3, 28x28 image, patch=14 -> 2x2=4 patches (+1 CLS)
    IMAGE_SIZE, PATCH = 28, 14
    image = jax.random.uniform(k_img, (2, 3, IMAGE_SIZE, IMAGE_SIZE),
                               jnp.float32, minval=-1.0, maxval=1.0)
    mask = (jax.random.uniform(k_mask, (2, 1, IMAGE_SIZE, IMAGE_SIZE)) > 0.2
            ).astype(jnp.float32)

    main_cfg = dict(  # DinoImageEncoder-like
        image_size=IMAGE_SIZE, patch_size=PATCH, in_channels=3,
        hidden=32, num_layers=2, num_heads=4, mlp_ratio=4,
        mean=[0.485, 0.456, 0.406], std=[0.229, 0.224, 0.225],
        ln_eps=1e-6, apply_pre_ln=False, apply_final_ln=True, use_cls_token=True)
    additional_cfg = dict(  # CLIPImageEncoder-like
        image_size=IMAGE_SIZE, patch_size=PATCH, in_channels=3,
        hidden=64, num_layers=2, num_heads=4, mlp_ratio=4,
        mean=[0.48145466, 0.4578275, 0.40821073],
        std=[0.26862954, 0.26130258, 0.27577711],
        ln_eps=1e-5, apply_pre_ln=True, apply_final_ln=False, use_cls_token=True)

    encoder = DualImageEncoderPallas(k_params, main_cfg, additional_cfg)

    # with mask
    outputs = jax.block_until_ready(encoder(image, mask=mask))
    assert outputs['main'].shape == (2, 5, 32), outputs['main'].shape
    assert outputs['additional'].shape == (2, 5, 64), outputs['additional'].shape
    assert bool(jnp.all(jnp.isfinite(outputs['main'])))
    assert bool(jnp.all(jnp.isfinite(outputs['additional'])))

    # without mask (no dummy ones-mask materialized)
    outputs_nm = jax.block_until_ready(encoder(image, mask=None))
    assert outputs_nm['main'].shape == (2, 5, 32)
    assert bool(jnp.all(jnp.isfinite(outputs_nm['additional'])))

    uncond = jax.block_until_ready(encoder.unconditional_embedding(2))
    assert uncond['main'].shape == (2, 5, 32)
    assert uncond['additional'].shape == (2, 5, 64)

    print("KERNEL_OK")
</pallas_src>

<mosaic_0001>
module attributes {stable_mosaic.version = 11 : i64} {
  func.func @kernel(%arg0: memref<2x4x588xf32, #tpu.memory_space<vmem>>, %arg1: memref<2x4x196xf32, #tpu.memory_space<vmem>>, %arg2: memref<1x588xf32, #tpu.memory_space<vmem>>, %arg3: memref<1x588xf32, #tpu.memory_space<vmem>>, %arg4: memref<588x32xbf16, #tpu.memory_space<vmem>>, %arg5: memref<1x32xf32, #tpu.memory_space<vmem>>, %arg6: memref<1x32xf32, #tpu.memory_space<vmem>>, %arg7: memref<5x32xf32, #tpu.memory_space<vmem>>, %arg8: memref<1x32xf32, #tpu.memory_space<vmem>>, %arg9: memref<1x32xf32, #tpu.memory_space<vmem>>, %arg10: memref<2x5x32xf32, #tpu.memory_space<vmem>>) attributes {dimension_semantics = [], scalar_prefetch = 0 : i64, scratch_operands = 0 : i64, tpu.core_type = #tpu.core_type<tc>} {
    %c0 = arith.constant 0 : index
    %c0_0 = arith.constant 0 : index
    %c0_1 = arith.constant 0 : index
    %0 = vector.load %arg0[%c0, %c0_0, %c0_1] : memref<2x4x588xf32, #tpu.memory_space<vmem>>, vector<2x4x588xf32>
    %cst = arith.constant -1.000000e+00 : f32
    %1 = vector.broadcast %cst : f32 to vector<2x4x588xf32>
    %2 = arith.subf %0, %1 : vector<2x4x588xf32>
    %cst_2 = arith.constant 5.000000e-01 : f32
    %3 = vector.broadcast %cst_2 : f32 to vector<2x4x588xf32>
    %4 = arith.mulf %2, %3 : vector<2x4x588xf32>
    %c0_3 = arith.constant 0 : index
    %c0_4 = arith.constant 0 : index
    %c0_5 = arith.constant 0 : index
    %5 = vector.load %arg1[%c0_3, %c0_4, %c0_5] : memref<2x4x196xf32, #tpu.memory_space<vmem>>, vector<2x4x196xf32>
    %6 = tpu.concatenate %5, %5, %5 in 2 : vector<2x4x196xf32>, vector<2x4x196xf32>, vector<2x4x196xf32> -> vector<2x4x588xf32>
    %7 = arith.mulf %4, %6 : vector<2x4x588xf32>
    %c0_6 = arith.constant 0 : index
    %c0_7 = arith.constant 0 : index
    %8 = vector.load %arg2[%c0_6, %c0_7] : memref<1x588xf32, #tpu.memory_space<vmem>>, vector<1x588xf32>
    %9 = vector.shape_cast %8 : vector<1x588xf32> to vector<1x1x588xf32>
    %10 = vector.broadcast %9 : vector<1x1x588xf32> to vector<2x4x588xf32>
    %11 = arith.subf %7, %10 : vector<2x4x588xf32>
    %c0_8 = arith.constant 0 : index
    %c0_9 = arith.constant 0 : index
    %12 = vector.load %arg3[%c0_8, %c0_9] : memref<1x588xf32, #tpu.memory_space<vmem>>, vector<1x588xf32>
    %13 = vector.shape_cast %12 : vector<1x588xf32> to vector<1x1x588xf32>
    %14 = vector.broadcast %13 : vector<1x1x588xf32> to vector<2x4x588xf32>
    %15 = arith.mulf %11, %14 : vector<2x4x588xf32>
    %16 = vector.shape_cast %15 : vector<2x4x588xf32> to vector<8x588xf32>
    %17 = arith.truncf %16 : vector<8x588xf32> to vector<8x588xbf16>
    %c0_10 = arith.constant 0 : index
    %c0_11 = arith.constant 0 : index
    %18 = vector.load %arg4[%c0_10, %c0_11] : memref<588x32xbf16, #tpu.memory_space<vmem>>, vector<588x32xbf16>
    %cst_12 = arith.constant dense<0.000000e+00> : vector<8x32xf32>
    %19 = tpu.matmul %17, %18, %cst_12 {dimension_numbers = #tpu.dot_dimension_numbers<[1], [0], [0], [1], [0, 0, 1, 1], [], []>} : vector<8x588xbf16>, vector<588x32xbf16>, vector<8x32xf32> -> vector<8x32xf32>
    %c0_13 = arith.constant 0 : index
    %c0_14 = arith.constant 0 : index
    %20 = vector.load %arg5[%c0_13, %c0_14] : memref<1x32xf32, #tpu.memory_space<vmem>>, vector<1x32xf32>
    %21 = vector.broadcast %20 : vector<1x32xf32> to vector<8x32xf32>
    %22 = arith.addf %19, %21 : vector<8x32xf32>
    %23 = vector.shape_cast %22 : vector<8x32xf32> to vector<2x4x32xf32>
    %c0_15 = arith.constant 0 : index
    %c0_16 = arith.constant 0 : index
    %24 = vector.load %arg6[%c0_15, %c0_16] : memref<1x32xf32, #tpu.memory_space<vmem>>, vector<1x32xf32>
    %25 = vector.shape_cast %24 : vector<1x32xf32> to vector<1x1x32xf32>
    %26 = vector.shape_cast %25 : vector<1x1x32xf32> to vector<1x1x32xf32>
    %27 = vector.broadcast %26 : vector<1x1x32xf32> to vector<2x1x32xf32>
    %c0_17 = arith.constant 0 : index
    %c0_18 = arith.constant 0 : index
    %c0_19 = arith.constant 0 : index
    %28 = vector.load %arg10[%c0_17, %c0_18, %c0_19] : memref<2x5x32xf32, #tpu.memory_space<vmem>>, vector<2x1x32xf32>
    tpu.vector_store %arg10[%c0_17, %c0_18, %c0_19], %27 {strides = array<i32>} : memref<2x5x32xf32, #tpu.memory_space<vmem>>, vector<2x1x32xf32>,
    %c0_20 = arith.constant 0 : index
    %c1 = arith.constant 1 : index
    %c0_21 = arith.constant 0 : index
    %29 = vector.load %arg10[%c0_20, %c1, %c0_21] : memref<2x5x32xf32, #tpu.memory_space<vmem>>, vector<2x4x32xf32>
    tpu.vector_store %arg10[%c0_20, %c1, %c0_21], %23 {strides = array<i32>} : memref<2x5x32xf32, #tpu.memory_space<vmem>>, vector<2x4x32xf32>,
    %c0_22 = arith.constant 0 : index
    %c0_23 = arith.constant 0 : index
    %c0_24 = arith.constant 0 : index
    %30 = vector.load %arg10[%c0_22, %c0_23, %c0_24] : memref<2x5x32xf32, #tpu.memory_space<vmem>>, vector<2x5x32xf32>
    %c0_25 = arith.constant 0 : index
    %c0_26 = arith.constant 0 : index
    %31 = vector.load %arg7[%c0_25, %c0_26] : memref<5x32xf32, #tpu.memory_space<vmem>>, vector<5x32xf32>
    %32 = vector.shape_cast %31 : vector<5x32xf32> to vector<1x5x32xf32>
    %33 = vector.broadcast %32 : vector<1x5x32xf32> to vector<2x5x32xf32>
    %34 = arith.addf %30, %33 : vector<2x5x32xf32>
    %c0_27 = arith.constant 0 : index
    %c0_28 = arith.constant 0 : index
    %c0_29 = arith.constant 0 : index
    %35 = vector.load %arg10[%c0_27, %c0_28, %c0_29] : memref<2x5x32xf32, #tpu.memory_space<vmem>>, vector<2x5x32xf32>
    tpu.vector_store %arg10[%c0_27, %c0_28, %c0_29], %34 {strides = array<i32>} : memref<2x5x32xf32, #tpu.memory_space<vmem>>, vector<2x5x32xf32>,
    return
  }
}

</mosaic_0001>

<bundles_post_ra>
// kernel: tpu_custom_call.1
= control target key start
LH: loop header
LB: loop body
LE: loop exit
PB: predicated region body
PF: predicated region fallthrough
CT: control target
= control target key end

     0   :  { %s805_s15 = smov 68   ;;  %s806_s30 = smov 8   ;;  %v807_v34 = vmov 0.0   ;;  %v116_v37 = vlaneseq  ;;  %vm70_vm0 = vcmask 556032   ;;  %vm85_vm1 = vcmask 64512   ;;  %s1097_s1 = inlined_call_operand.vmem [shape: f32[2,4,196], index: 1, kind: input, shape index: {}]   ;;  %s1098_s4 = inlined_call_operand.vmem [shape: bf16[588,32], index: 4, kind: input, shape index: {}]   ;;  %s1099_s8 = inlined_call_operand.vmem [shape: f32[1,32], index: 8, kind: input, shape index: {}]   ;;  %s1100_s9 = inlined_call_operand.vmem [shape: f32[1,32], index: 9, kind: input, shape index: {}]   ;;  %s1101_s0 = inlined_call_operand.vmem [shape: f32[2,4,588], index: 0, kind: input, shape index: {}]   ;;  %s1102_s2 = inlined_call_operand.vmem [shape: f32[1,588], index: 2, kind: input, shape index: {}]   ;;  %s1103_s3 = inlined_call_operand.vmem [shape: f32[1,588], index: 3, kind: input, shape index: {}]   ;;  %s1104_s6 = inlined_call_operand.vmem [shape: f32[1,32], index: 6, kind: input, shape index: {}]   ;;  %s1105_s10 = inlined_call_operand.vmem [shape: f32[2,5,32], index: 10, kind: output, shape index: {}]   ;;  %s1106_s5 = inlined_call_operand.vmem [shape: f32[1,32], index: 5, kind: input, shape index: {}]   ;;  %s1107_s7 = inlined_call_operand.vmem [shape: f32[5,32], index: 7, kind: input, shape index: {}]  }
   0x1   :  { %v867_v0 = vld [vmem:[%s1097_s1] sm:$0xff]  ;;  %v872_v1 = vld [vmem:[%s1097_s1 + $0x8] sm:$0xff]  ;;  %v768_v3 = vld [vmem:[%s1098_s4 + $0x78] sm:$0xff]   ;;  %vm507_vm2 = vcmask 1045504   ;;  %vm808_vm3 = vmmov 0   ;;  %vm503_vm4 = vcmask 621568  }
   0x2   :  { %62 = vrot.lane.b32.xlu0 %v867_v0, %s805_s15  ;;  %v877_v2 = vcombine.high %v867_v0, %v867_v0  ;;  %v769_v4 = vld [vmem:[%s1098_s4 + $0x38] sm:$0xff]   ;;  %v888_v5 = vcombine.high %v872_v1, %v872_v1  ;;  %698 = vmatprep.subr.bf16.mxu0 %v768_v3  ;;  %v770_v6 = vld [vmem:[%s1098_s4 + $0x70] sm:$0xff]   ;;  %v773_v9 = vld [vmem:[%s1098_s4 + $0x68] sm:$0xff]   ;;  %v987_v38 = vshrl.u32 %v116_v37, 7  ;;  %vm635_vm5 = vcmask 253952  }
   0x3   :  { %699 = vmatpush3.bf16.msra.mxu0 %v769_v4  ;;  %v771_v7 = vld [vmem:[%s1098_s4 + $0x30] sm:$0xff]   ;;  %v772_v8 = vld [vmem:[%s1098_s4 + $0xf8] sm:$0xff]   ;;  %v775_v11 = vld [vmem:[%s1098_s4 + $0x28] sm:$0xff]   ;;  %vm638_vm6 = vcmask 257024   ;;  %vm646_vm7 = vcmask 258048  }
   0x4   :  { %64 = vrot.lane.b32.xlu1 %v877_v2, %s805_s15  ;;  %700 = vmatprep.subr.bf16.mxu0 %v770_v6  ;;  %v774_v10 = vld [vmem:[%s1098_s4 + $0xb8] sm:$0xff]   ;;  %v776_v12 = vld [vmem:[%s1098_s4 + $0xf0] sm:$0xff]   ;;  %v777_v13 = vld [vmem:[%s1098_s4 + $0x60] sm:$0xff]   ;;  %v118_v42 = vsub.s32 0, %v987_v38  ;;  %v122_v43 = vsub.s32 1, %v987_v38  ;;  %v126_v58 = vsub.s32 2, %v987_v38 }
   0x5   :  { %720 = vmatprep.subr.bf16.mxu1 %v772_v8  ;;  %v778_v14 = vld [vmem:[%s1098_s4 + $0xb0] sm:$0xff]   ;;  %v779_v15 = vld [vmem:[%s1098_s4 + $0x20] sm:$0xff]   ;;  %v780_v16 = vld [vmem:[%s1098_s4 + $0xe8] sm:$0xff]   ;;  %v130_v59 = vsub.s32 3, %v987_v38 }
   0x6   :  { %66 = vrot.lane.b32.xlu0 %v872_v1, %s805_s15  ;;  %721 = vmatpush3.bf16.msra.mxu1 %v774_v10  ;;  %v781_v17 = vld [vmem:[%s1098_s4 + $0x58] sm:$0xff]   ;;  %v782_v18 = vld [vmem:[%s1098_s4 + $0xa8] sm:$0xff]   ;;  %v784_v20 = vld [vmem:[%s1098_s4 + $0xe0] sm:$0xff]  }
   0x7   :  { %701 = vmatpush3.bf16.msra.mxu0 %v771_v7  ;;  %722 = vmatprep.subr.bf16.mxu1 %v776_v12  ;;  %v783_v19 = vld [vmem:[%s1098_s4 + $0x18] sm:$0xff]   ;;  %v785_v21 = vld [vmem:[%s1098_s4 + $0x50] sm:$0xff]   ;;  %v786_v22 = vld [vmem:[%s1098_s4 + $0xa0] sm:$0xff]  }
   0x8   :  { %68 = vrot.lane.b32.xlu1 %v888_v5, %s805_s15  ;;  %702 = vmatprep.subr.bf16.mxu0 %v773_v9  ;;  %v787_v23 = vld [vmem:[%s1098_s4 + $0x10] sm:$0xff]   ;;  %v788_v24 = vld [vmem:[%s1098_s4 + $0xd8] sm:$0xff]   ;;  %v789_v25 = vld [vmem:[%s1098_s4 + $0x48] sm:$0xff]  }
   0x9   :  { %v790_v26 = vld [vmem:[%s1098_s4 + $0x98] sm:$0xff]   ;;  %v791_v27 = vld [vmem:[%s1098_s4 + $0x8] sm:$0xff]   ;;  %v792_v28 = vld [vmem:[%s1098_s4 + $0xd0] sm:$0xff]  }
   0xa   :  { %77 = vrot.lane.b32.xlu0 %v867_v0, %s806_s30  ;;  %723 = vmatpush3.bf16.msra.mxu1 %v778_v14  ;;  %v793_v29 = vld [vmem:[%s1098_s4 + $0x40] sm:$0xff]   ;;  %v794_v30 = vld [vmem:[%s1098_s4 + $0x90] sm:$0xff]   ;;  %v796_v32 = vld [vmem:[%s1098_s4 + $0xc8] sm:$0xff]  }
   0xb   :  { %703 = vmatpush3.bf16.msra.mxu0 %v775_v11  ;;  %724 = vmatprep.subr.bf16.mxu1 %v780_v16  ;;  %v795_v31 = vld [vmem:[%s1098_s4] sm:$0xff]   ;;  %v797_v33 = vld [vmem:[%s1098_s4 + $0x88] sm:$0xff]   ;;  %v39_v41 = vld [vmem:[%s1101_s0 + $0x14] sm:$0xff] }
   0xc   :  { %81 = vrot.lane.b32.xlu1 %v872_v1, %s806_s30  ;;  %704 = vmatprep.subr.bf16.mxu0 %v777_v13  ;;  %v799_v35 = vld [vmem:[%s1098_s4 + $0xc0] sm:$0xff]   ;;  %v656_v45 = vadd.f32 1.0, %v39_v41  ;;  %v37_v48 = vld [vmem:[%s1101_s0 + $0x8] sm:$0xff]  ;;  %v134_v41 = vsub.s32 4, %v987_v38  ;;  %v801_v38 = vld [vmem:[%s1098_s4 + $0x118] sm:$0xff]  }
   0xd   :  { %v800_v36 = vld [vmem:[%s1098_s4 + $0x80] sm:$0xff]   ;;  %v654_v56 = vadd.f32 1.0, %v37_v48 }
   0xe   :  { %79 = vrot.lane.b32.xlu0 %v877_v2, %s806_s30  ;;  %725 = vmatpush3.bf16.msra.mxu1 %v782_v18  ;;  %v36_v39 = vld [vmem:[%s1101_s0] sm:$0xff]  ;;  %v51_v55 = vmul.f32 0.5, %v656_v45 }
   0xf   :  { %705 = vmatpush3.bf16.msra.mxu0 %v779_v15  ;;  %726 = vmatprep.subr.bf16.mxu1 %v784_v20  ;;  %v653_v40 = vadd.f32 1.0, %v36_v39  ;;  %v1000_v44 = vld [vmem:[%s1102_s2] sm:$0x1f]  ;;  %v49_v11 = vmul.f32 0.5, %v654_v56 }
  0x10   :  { %83 = vrot.lane.b32.xlu1 %v888_v5, %s806_s30  ;;  %706 = vmatprep.subr.bf16.mxu0 %v781_v17  ;;  %v119_v49 = vrot.slane %v1000_v44, %v118_v42  ;;  %v123_v50 = vrot.slane %v1000_v44, %v122_v43  ;;  %v1012_v52 = vld [vmem:[%s1103_s3] sm:$0x1f]  ;;  %v127_v7 = vrot.slane %v1000_v44, %v126_v58 }
  0x11   :  { %v48_v47 = vmul.f32 0.5, %v653_v40  ;;  %v40_v57 = vld [vmem:[%s1101_s0 + $0x1c] sm:$0xff]  ;;  %v152_v63 = vrot.slane %v1012_v52, %v118_v42  ;;  %v131_v8 = vrot.slane %v1000_v44, %v130_v59  ;;  %v41_v18 = vld [vmem:[%s1101_s0 + $0x24] sm:$0xf]  ;;  %v160_v20 = vrot.slane %v1012_v52, %v126_v58 }
  0x12   :  { %727 = vmatpush3.bf16.msra.mxu1 %v786_v22  ;;  %v137_v62 = vcombine.low %v119_v49, %v123_v50  ;;  %v657_v6 = vadd.f32 1.0, %v40_v57 }
  0x13   :  { %707 = vmatpush3.bf16.msra.mxu0 %v783_v19  ;;  %728 = vmatprep.subr.bf16.mxu1 %v788_v24  ;;  %v164_v24 = vrot.slane %v1012_v52, %v130_v59 }
  0x14   :  { %708 = vmatprep.subr.bf16.mxu0 %v785_v21  ;;  %v52_v17 = vmul.f32 0.5, %v657_v6 }
  0x15   :  { %v171_v40 = vcombine.low %v160_v20, %v164_v24  ;;  %v643_v24 = vld [vmem:[%s1107_s7] sm:$0x1f] }
  0x16   :  { %729 = vmatpush3.bf16.msra.mxu1 %v790_v26 }
  0x17   :  { %709 = vmatpush3.bf16.msra.mxu0 %v787_v23  ;;  %730 = vmatprep.subr.bf16.mxu1 %v792_v28  ;;  %v138_v23 = vcombine.low %v127_v7, %v131_v8  ;;  %v634_v7 = vld [vmem:[%s1104_s6] sm:$0x1] }
  0x18   :  { %710 = vmatprep.subr.bf16.mxu0 %v789_v25  ;;  %636 = vst.msk [vmem:[%s1105_s10] sm:$0x1] %vm635_vm5, %v634_v7  ;;  %637 = vst.msk [vmem:[%s1105_s10 + $0x8] sm:$0x1] %vm635_vm5, %v634_v7 }
  0x1a   :  { %731 = vmatpush3.bf16.msra.mxu1 %v794_v30  ;;  %v658_v30 = vadd.f32 1.0, %v41_v18 }
  0x1b   :  { %711 = vmatpush3.bf16.msra.mxu0 %v791_v27  ;;  %732 = vmatprep.subr.bf16.mxu1 %v796_v32 }
  0x1c   :  { %712 = vmatprep.subr.bf16.mxu0 %v793_v29 }
  0x1e   :  { %733 = vmatpush3.bf16.msra.mxu1 %v797_v33 }
  0x1f   :  { %713 = vmatpush3.bf16.msra.mxu0 %v795_v31  ;;  %734 = vmatprep.subr.bf16.mxu1 %v799_v35  ;;  %v798_v31 = vld [vmem:[%s1098_s4 + $0x120] sm:$0x3f]  }
  0x20   :  { %748 = vmatprep.subr.bf16.mxu0 %v807_v34 }
  0x22   :  { %735 = vmatpush3.bf16.msra.mxu1 %v800_v36 }
  0x74   :  { %v63_v46 = vpop.permute.xlu0 %62 }
  0x75   :  { %v92_v51 = vsel %vm70_vm0, %v877_v2, %v63_v46  ;;  %v156_v2 = vrot.slane %v1012_v52, %v122_v43 }
  0x76   :  { %v100_v53 = vcombine.low %v867_v0, %v92_v51  ;;  %v65_v54 = vpop.permute.xlu1 %64 }
  0x77   :  { %v170_v13 = vcombine.low %v152_v63, %v156_v2  ;;  %v71_v14 = vsel %vm70_vm0, %v63_v46, %v65_v54  ;;  %v53_v46 = vmul.f32 0.5, %v658_v30  ;;  %v803_v2 = vld [vmem:[%s1098_s4 + $0x108] sm:$0xff]  }
  0x78   :  { %v108_v60 = vmul.f32 %v100_v53, %v48_v47  ;;  %v67_v61 = vpop.permute.xlu0 %66  ;;  %v509_v47 = vsel %vm507_vm2, %v798_v31, 0 }
  0x79   :  { %v93_v0 = vsel %vm70_vm0, %v888_v5, %v67_v61 }
  0x7a   :  { %v102_v3 = vcombine.low %v872_v1, %v93_v0  ;;  %v69_v4 = vpop.permute.xlu1 %68  ;;  %v141_v12 = vsub.f32 %v108_v60, %v137_v62  ;;  %v38_v1 = vld [vmem:[%s1101_s0 + $0x10] sm:$0xf] }
  0x7b   :  { %v72_v21 = vsel %vm70_vm0, %v67_v61, %v69_v4  ;;  %v655_v29 = vadd.f32 1.0, %v38_v1  ;;  %v168_v61 = vrot.slane %v1012_v52, %v134_v41  ;;  %v804_v52 = vld [vmem:[%s1098_s4 + $0x100] sm:$0xff]  }
  0x7c   :  { %v111_v9 = vmul.f32 %v102_v3, %v51_v55  ;;  %v78_v10 = vpop.permute.xlu0 %77  ;;  %v174_v27 = vmul.f32 %v170_v13, %v141_v12 }
  0x7d   :  { %v94_v15 = vsel %vm85_vm1, %v65_v54, %v78_v10  ;;  %v50_v45 = vmul.f32 0.5, %v655_v29  ;;  %v135_v54 = vrot.slane %v1000_v44, %v134_v41  ;;  %v802_v44 = vld [vmem:[%s1098_s4 + $0x110] sm:$0xff]  }
  0x7e   :  { %v101_v16 = vcombine.low %v71_v14, %v94_v15  ;;  %v82_v5 = vpop.permute.xlu1 %81  ;;  %v144_v19 = vsub.f32 %v111_v9, %v137_v62 }
  0x7f   :  { %v95_v22 = vsel %vm85_vm1, %v69_v4, %v82_v5 }
  0x80   :  { %v109_v25 = vmul.f32 %v101_v16, %v49_v11  ;;  %v103_v26 = vcombine.low %v72_v21, %v95_v22  ;;  %v177_v28 = vmul.f32 %v170_v13, %v144_v19  ;;  %v80_v36 = vpop.permute.xlu0 %79  ;;  %v659_v16 = vld [vmem:[%s1106_s5] ss:$0 sm:$0xff] }
  0x81   :  { %v86_v49 = vsel %vm85_vm1, %v78_v10, %v80_v36 }
  0x82   :  { %v112_v32 = vmul.f32 %v103_v26, %v52_v17  ;;  %v187_v33 = vcombine.high %v174_v27, %v177_v28  ;;  %v186_v35 = vcombine.low %v174_v27, %v177_v28  ;;  %v84_v37 = vpop.permute.xlu1 %83  ;;  %v142_v39 = vsub.f32 %v109_v25, %v138_v23 }
  0x83   :  { %v87_v50 = vsel %vm85_vm1, %v82_v5, %v84_v37  ;;  %v110_v55 = vmul.f32 %v86_v49, %v50_v45 }
  0x84   :  { %v197_v42 = vpack.c.bf16 %v187_v33, %v187_v33  ;;  %v196_v43 = vpack.c.bf16 %v186_v35, %v186_v35  ;;  %v145_v48 = vsub.f32 %v112_v32, %v138_v23  ;;  %v175_v51 = vmul.f32 %v171_v40, %v142_v39 }
  0x85   :  { %v113_v56 = vmul.f32 %v87_v50, %v53_v46  ;;  %v143_v62 = vsub.f32 %v110_v55, %v135_v54 }
  0x86   :  { %543 = vmatprep.mubr.bf16.mxu0 %v197_v42  ;;  %v178_v53 = vmul.f32 %v171_v40, %v145_v48 }
  0x87   :  { %544 = vmatmul.mubr.bf16.vlgmr.msra.gmra.mxu0 %v196_v43  ;;  %v146_v63 = vsub.f32 %v113_v56, %v135_v54  ;;  %v176_v0 = vmul.f32 %v168_v61, %v143_v62 }
  0x88   :  { %749 = vmatpush3.bf16.msra.mxu0 %v509_v47  ;;  %758 = vmatprep.mubr.msk.bf16.mxu0 %vm808_vm3, %v807_v34  ;;  %v189_v57 = vcombine.high %v175_v51, %v178_v53  ;;  %v188_v58 = vcombine.low %v175_v51, %v178_v53 }
  0x89   :  { %750 = vmatprep.subr.bf16.mxu0 %v807_v34  ;;  %v179_v3 = vmul.f32 %v168_v61, %v146_v63 }
  0x8a   :  { %v199_v59 = vpack.c.bf16 %v189_v57, %v189_v57  ;;  %v198_v60 = vpack.c.bf16 %v188_v58, %v188_v58 }
  0x8b   :  { %v190_v4 = vcombine.low %v176_v0, %v179_v3 }
  0x8c   :  { %751 = vmatpush3.bf16.msra.mxu0 %v801_v38  ;;  %583 = vmatprep.mubr.bf16.mxu1 %v199_v59 }
  0x8d   :  { %752 = vmatprep.subr.bf16.mxu0 %v807_v34  ;;  %584 = vmatmul.mubr.bf16.vlgmr.msra.gmra.mxu1 %v198_v60  ;;  %v200_v6 = vpack.c.bf16 %v190_v4, %v190_v4 }
  0x90   :  { %753 = vmatpush3.bf16.msra.mxu0 %v802_v44 }
  0x91   :  { %754 = vmatprep.subr.bf16.mxu0 %v807_v34 }
  0x94   :  { %755 = vmatpush3.bf16.msra.mxu0 %v803_v2 }
  0x95   :  { %756 = vmatprep.subr.bf16.mxu0 %v807_v34 }
  0x98   :  { %757 = vmatpush3.bf16.msra.mxu0 %v804_v52 }
  0x9b   :  { %759 = vmatmul.mubr.msk.bf16.vlgmr.msra.gmra.mxu0 %vm503_vm4, %v200_v6 }
 0x147   :  { %v714_v8 = vpop.f32.mrf.mxu0 }
 0x149   :  { %v715_v9 = vpop.f32.mrf.mxu0 }
 0x14a   :  { %v716_v14 = vadd.f32 %v715_v9, %v714_v8 }
 0x14b   :  { %v717_v34 = vpop.f32.mrf.mxu0 }
 0x14c   :  { %v546_v17 = vadd.f32 %v716_v14, %v659_v16 }
 0x14d   :  { %v718_v10 = vpop.f32.mrf.mxu0  ;;  %v736_v11 = vpop.f32.mrf.mxu1 }
 0x14f   :  { %v737_v12 = vpop.f32.mrf.mxu1 }
 0x150   :  { %v738_v5 = vadd.f32 %v737_v12, %v736_v11 }
 0x151   :  { %v739_v13 = vpop.f32.mrf.mxu1 }
 0x152   :  { %v586_v1 = vadd.f32 %v738_v5, %v546_v17 }
 0x153   :  { %v740_v15 = vpop.f32.mrf.mxu1 }
 0x15b   :  { %v625_v18 = vpop.f32.mrf.mxu0 }
 0x15c   :  { %v626_v19 = vadd.f32 %v625_v18, %v586_v1 }
 0x15d   :  { %v760_v20 = vpop.f32.mrf.mxu0 }
 0x15e   :  { %v632_v21 = vcombine.high %v626_v19, %v626_v19  ;;  %639 = vst.msk [vmem:[%s1105_s10 + $0x1] sm:$0xf] %vm638_vm6, %v626_v19 }
 0x15f   :  { %v628_v22 = vpop.f32.mrf.mxu0 }
 0x160   :  { %640 = vst.msk [vmem:[%s1105_s10 + $0x9] sm:$0xf] %vm638_vm6, %v632_v21 }
 0x161   :  { %v761_v23 = vpop.f32.mrf.mxu0 }
 0x165   :  { %v641_v25 = vld [vmem:[%s1105_s10] sm:$0x1f] }
 0x166   :  { %v644_v26 = vadd.f32 %v643_v24, %v641_v25 }
 0x167   :  { %v642_v27 = vld [vmem:[%s1105_s10 + $0x8] sm:$0x1f] }
 0x168   :  { %v645_v28 = vadd.f32 %v643_v24, %v642_v27  ;;  %647 = vst.msk [vmem:[%s1105_s10] sm:$0x1f] %vm646_vm7, %v644_v26 }
 0x16a   :  { %648 = vst.msk [vmem:[%s1105_s10 + $0x8] sm:$0x1f] %vm646_vm7, %v645_v28 }

</bundles_post_ra>
